<compile_context>
chip_gen: v7x
topology: tpu7x:2x2x1
jax: 0.10.0
libtpu: 0.0.40
codegen_flags: <defaults>
</compile_context>

<pallas_src>
import jax
import jax.numpy as jnp
from jax.experimental import pallas as pl
from jax.experimental.pallas import tpu as pltpu


EPS = 1e-5


def _dense_layer_kernel(x_ref, a_ref, w1_ref, gb1_ref, w2_ref, gb2_ref, o_ref):
    # Everything lives in VMEM; single grid point, intermediates stay on chip.
    a = a_ref[...]                                              # bf16 [N, N]

    def graph_conv_bn_relu(x_bf16, w_ref, gb_ref):
        # Neighbor aggregation (aggr='add') as a dense matmul on the MXU.
        agg = jnp.dot(a, x_bf16, preferred_element_type=jnp.float32)   # [N, Fin] f32

        # Fused root + rel projection: one MXU push with K = 2*Fin.
        #   concat([x, A@x], axis=1) @ [W_root; W_rel]
        xa = jnp.concatenate([x_bf16, agg.astype(jnp.bfloat16)], axis=1)
        h = jnp.dot(xa, w_ref[...], preferred_element_type=jnp.float32)  # [N, H] f32
        # (GraphConv lin_rel bias omitted: exactly cancelled by BN mean sub.)

        # NodeLevelBatchNorm, training mode: batch stats over nodes, biased var.
        # Two-pass (centered) variance in f32 for accuracy; rsqrt on the EUP.
        inv_n = 1.0 / jnp.float32(h.shape[0])
        mean = jnp.sum(h, axis=0, keepdims=True) * inv_n                # [1, H]
        centered = h - mean
        var = jnp.sum(centered * centered, axis=0, keepdims=True) * inv_n
        inv = jax.lax.rsqrt(var + EPS)

        gamma = gb_ref[0:1, :]                                          # [1, H]
        beta = gb_ref[1:2, :]                                           # [1, H]
        y = centered * (inv * gamma) + beta

        # ReLU.
        return jnp.maximum(y, 0.0)

    y1 = graph_conv_bn_relu(x_ref[...], w1_ref, gb1_ref)                # [N, H1] f32
    y2 = graph_conv_bn_relu(y1.astype(jnp.bfloat16), w2_ref, gb2_ref)   # [N, H2] f32
    o_ref[...] = y2.astype(o_ref.dtype)


def dense_layer_forward(x_list, adj, params):
    """DenseLayer.forward: concat feature chunks, then conv1 -> conv2 (one kernel)."""
    if not isinstance(x_list, (list, tuple)):
        x_list = [x_list]
    # torch.cat(data.x, 1): a single chunk needs no copy.
    x = x_list[0] if len(x_list) == 1 else jnp.concatenate(list(x_list), axis=1)

    w1, gb1 = params["conv1"]
    w2, gb2 = params["conv2"]
    n = x.shape[0]
    h_out = w2.shape[1]

    vmem = pl.BlockSpec(memory_space=pltpu.MemorySpace.VMEM)
    # Single grid-less call: the N^2 adjacency, weights and the [N, H1]
    # intermediate all fit in VMEM by a wide margin at these sizes.
    # TODO(synk): for large graphs (N >~ 2k) tile a "parallel" grid over
    # destination-node rows (two grid passes for the BN reduction) so the plan
    # also fits v7x's 64 MiB VMEM and uses both of its TensorCores.
    return pl.pallas_call(
        _dense_layer_kernel,
        out_shape=jax.ShapeDtypeStruct((n, h_out), jnp.float32),
        in_specs=[vmem] * 6,
        out_specs=vmem,
    )(x.astype(jnp.bfloat16), adj.astype(jnp.bfloat16),
      w1.astype(jnp.bfloat16), gb1, w2.astype(jnp.bfloat16), gb2)


def init_params(key, num_input_features, growth_rate=32, bn_size=4):
    h1 = int(growth_rate * bn_size)

    def layer(key, fin, fout):
        k1, k2, k3 = jax.random.split(key, 3)
        scale = 1.0 / jnp.sqrt(jnp.float32(fin))
        w_root = jax.random.normal(k1, (fin, fout), jnp.float32) * scale
        w_rel = jax.random.normal(k2, (fin, fout), jnp.float32) * scale
        gamma = 1.0 + 0.1 * jax.random.normal(k3, (fout,), jnp.float32)
        beta = jnp.zeros((fout,), jnp.float32)
        # Pre-stack: [W_root; W_rel] rows match concat([x, A@x], axis=1) cols;
        # gamma/beta packed into one [2, fout] array (fewer tiny DMAs).
        w_stacked = jnp.concatenate([w_root, w_rel], axis=0)    # [2*fin, fout]
        gb = jnp.stack([gamma, beta], axis=0)                   # [2, fout]
        return (w_stacked, gb)

    k1, k2 = jax.random.split(key)
    return {
        "conv1": layer(k1, num_input_features, h1),
        "conv2": layer(k2, h1, growth_rate),
    }


if __name__ == "__main__":
    key = jax.random.PRNGKey(0)

    num_nodes = 16
    num_input_features = 32
    growth_rate = 32
    bn_size = 4
    num_edges = 48

    k_x, k_e, k_p = jax.random.split(key, 3)

    # Node features (data.x) — a single tensor, wrapped into a list by forward.
    x = jax.random.normal(k_x, (num_nodes, num_input_features), jnp.float32)

    # Random edge_index [2, E] -> dense adjacency A[dst, src] += 1 (aggr='add').
    edge_index = jax.random.randint(k_e, (2, num_edges), 0, num_nodes)
    adj = jnp.zeros((num_nodes, num_nodes), jnp.float32).at[
        edge_index[1], edge_index[0]].add(1.0)

    params = init_params(k_p, num_input_features, growth_rate, bn_size)

    out = dense_layer_forward([x], adj, params)
    out = jax.block_until_ready(out)

    assert out.shape == (num_nodes, growth_rate), out.shape
    assert out.dtype == jnp.float32
    assert bool(jnp.all(jnp.isfinite(out)))
    assert bool(jnp.all(out >= 0.0))  # ReLU output

    print("KERNEL_OK")
</pallas_src>

<mosaic_0001>
module attributes {stable_mosaic.version = 11 : i64} {
  func.func @_dense_layer_kernel(%arg0: memref<16x32xbf16, #tpu.memory_space<vmem>>, %arg1: memref<16x16xbf16, #tpu.memory_space<vmem>>, %arg2: memref<64x128xbf16, #tpu.memory_space<vmem>>, %arg3: memref<2x128xf32, #tpu.memory_space<vmem>>, %arg4: memref<256x32xbf16, #tpu.memory_space<vmem>>, %arg5: memref<2x32xf32, #tpu.memory_space<vmem>>, %arg6: memref<16x32xf32, #tpu.memory_space<vmem>>) attributes {dimension_semantics = [], scalar_prefetch = 0 : i64, scratch_operands = 0 : i64, tpu.core_type = #tpu.core_type<tc>} {
    %c0 = arith.constant 0 : index
    %c0_0 = arith.constant 0 : index
    %0 = vector.load %arg1[%c0, %c0_0] : memref<16x16xbf16, #tpu.memory_space<vmem>>, vector<16x16xbf16>
    %c0_1 = arith.constant 0 : index
    %c0_2 = arith.constant 0 : index
    %1 = vector.load %arg0[%c0_1, %c0_2] : memref<16x32xbf16, #tpu.memory_space<vmem>>, vector<16x32xbf16>
    %cst = arith.constant dense<0.000000e+00> : vector<16x32xf32>
    %2 = tpu.matmul %0, %1, %cst {dimension_numbers = #tpu.dot_dimension_numbers<[1], [0], [0], [1], [0, 0, 1, 1], [], []>} : vector<16x16xbf16>, vector<16x32xbf16>, vector<16x32xf32> -> vector<16x32xf32>
    %3 = arith.truncf %2 : vector<16x32xf32> to vector<16x32xbf16>
    %4 = tpu.concatenate %1, %3 in 1 : vector<16x32xbf16>, vector<16x32xbf16> -> vector<16x64xbf16>
    %c0_3 = arith.constant 0 : index
    %c0_4 = arith.constant 0 : index
    %5 = vector.load %arg2[%c0_3, %c0_4] : memref<64x128xbf16, #tpu.memory_space<vmem>>, vector<64x128xbf16>
    %cst_5 = arith.constant dense<0.000000e+00> : vector<16x128xf32>
    %6 = tpu.matmul %4, %5, %cst_5 {dimension_numbers = #tpu.dot_dimension_numbers<[1], [0], [0], [1], [0, 0, 1, 1], [], []>} : vector<16x64xbf16>, vector<64x128xbf16>, vector<16x128xf32> -> vector<16x128xf32>
    %cst_6 = arith.constant 1.000000e+00 : f32
    %cst_7 = arith.constant 1.600000e+01 : f32
    %7 = arith.divf %cst_6, %cst_7 : f32
    %cst_8 = arith.constant dense<0.000000e+00> : vector<128xf32>
    %8 = vector.multi_reduction <add>, %6, %cst_8 [0] : vector<16x128xf32> to vector<128xf32>
    %9 = vector.shape_cast %8 : vector<128xf32> to vector<1x128xf32>
    %10 = vector.broadcast %7 : f32 to vector<1x128xf32>
    %11 = arith.mulf %9, %10 : vector<1x128xf32>
    %12 = vector.broadcast %11 : vector<1x128xf32> to vector<16x128xf32>
    %13 = arith.subf %6, %12 : vector<16x128xf32>
    %14 = arith.mulf %13, %13 : vector<16x128xf32>
    %cst_9 = arith.constant dense<0.000000e+00> : vector<128xf32>
    %15 = vector.multi_reduction <add>, %14, %cst_9 [0] : vector<16x128xf32> to vector<128xf32>
    %16 = vector.shape_cast %15 : vector<128xf32> to vector<1x128xf32>
    %17 = vector.broadcast %7 : f32 to vector<1x128xf32>
    %18 = arith.mulf %16, %17 : vector<1x128xf32>
    %cst_10 = arith.constant 9.99999974E-6 : f32
    %19 = vector.broadcast %cst_10 : f32 to vector<1x128xf32>
    %20 = arith.addf %18, %19 : vector<1x128xf32>
    %21 = math.rsqrt %20 : vector<1x128xf32>
    %c0_11 = arith.constant 0 : index
    %c0_12 = arith.constant 0 : index
    %22 = vector.load %arg3[%c0_11, %c0_12] : memref<2x128xf32, #tpu.memory_space<vmem>>, vector<1x128xf32>
    %c1 = arith.constant 1 : index
    %c0_13 = arith.constant 0 : index
    %23 = vector.load %arg3[%c1, %c0_13] : memref<2x128xf32, #tpu.memory_space<vmem>>, vector<1x128xf32>
    %24 = arith.mulf %21, %22 : vector<1x128xf32>
    %25 = vector.broadcast %24 : vector<1x128xf32> to vector<16x128xf32>
    %26 = arith.mulf %13, %25 : vector<16x128xf32>
    %27 = vector.broadcast %23 : vector<1x128xf32> to vector<16x128xf32>
    %28 = arith.addf %26, %27 : vector<16x128xf32>
    %cst_14 = arith.constant 0.000000e+00 : f32
    %29 = vector.broadcast %cst_14 : f32 to vector<16x128xf32>
    %30 = arith.maximumf %28, %29 : vector<16x128xf32>
    %31 = arith.truncf %30 : vector<16x128xf32> to vector<16x128xbf16>
    %cst_15 = arith.constant dense<0.000000e+00> : vector<16x128xf32>
    %32 = tpu.matmul %0, %31, %cst_15 {dimension_numbers = #tpu.dot_dimension_numbers<[1], [0], [0], [1], [0, 0, 1, 1], [], []>} : vector<16x16xbf16>, vector<16x128xbf16>, vector<16x128xf32> -> vector<16x128xf32>
    %33 = arith.truncf %32 : vector<16x128xf32> to vector<16x128xbf16>
    %34 = tpu.concatenate %31, %33 in 1 : vector<16x128xbf16>, vector<16x128xbf16> -> vector<16x256xbf16>
    %c0_16 = arith.constant 0 : index
    %c0_17 = arith.constant 0 : index
    %35 = vector.load %arg4[%c0_16, %c0_17] : memref<256x32xbf16, #tpu.memory_space<vmem>>, vector<256x32xbf16>
    %cst_18 = arith.constant dense<0.000000e+00> : vector<16x32xf32>
    %36 = tpu.matmul %34, %35, %cst_18 {dimension_numbers = #tpu.dot_dimension_numbers<[1], [0], [0], [1], [0, 0, 1, 1], [], []>} : vector<16x256xbf16>, vector<256x32xbf16>, vector<16x32xf32> -> vector<16x32xf32>
    %cst_19 = arith.constant 1.000000e+00 : f32
    %cst_20 = arith.constant 1.600000e+01 : f32
    %37 = arith.divf %cst_19, %cst_20 : f32
    %cst_21 = arith.constant dense<0.000000e+00> : vector<32xf32>
    %38 = vector.multi_reduction <add>, %36, %cst_21 [0] : vector<16x32xf32> to vector<32xf32>
    %39 = vector.shape_cast %38 : vector<32xf32> to vector<1x32xf32>
    %40 = vector.broadcast %37 : f32 to vector<1x32xf32>
    %41 = arith.mulf %39, %40 : vector<1x32xf32>
    %42 = vector.broadcast %41 : vector<1x32xf32> to vector<16x32xf32>
    %43 = arith.subf %36, %42 : vector<16x32xf32>
    %44 = arith.mulf %43, %43 : vector<16x32xf32>
    %cst_22 = arith.constant dense<0.000000e+00> : vector<32xf32>
    %45 = vector.multi_reduction <add>, %44, %cst_22 [0] : vector<16x32xf32> to vector<32xf32>
    %46 = vector.shape_cast %45 : vector<32xf32> to vector<1x32xf32>
    %47 = vector.broadcast %37 : f32 to vector<1x32xf32>
    %48 = arith.mulf %46, %47 : vector<1x32xf32>
    %cst_23 = arith.constant 9.99999974E-6 : f32
    %49 = vector.broadcast %cst_23 : f32 to vector<1x32xf32>
    %50 = arith.addf %48, %49 : vector<1x32xf32>
    %51 = math.rsqrt %50 : vector<1x32xf32>
    %c0_24 = arith.constant 0 : index
    %c0_25 = arith.constant 0 : index
    %52 = vector.load %arg5[%c0_24, %c0_25] : memref<2x32xf32, #tpu.memory_space<vmem>>, vector<1x32xf32>
    %c1_26 = arith.constant 1 : index
    %c0_27 = arith.constant 0 : index
    %53 = vector.load %arg5[%c1_26, %c0_27] : memref<2x32xf32, #tpu.memory_space<vmem>>, vector<1x32xf32>
    %54 = arith.mulf %51, %52 : vector<1x32xf32>
    %55 = vector.broadcast %54 : vector<1x32xf32> to vector<16x32xf32>
    %56 = arith.mulf %43, %55 : vector<16x32xf32>
    %57 = vector.broadcast %53 : vector<1x32xf32> to vector<16x32xf32>
    %58 = arith.addf %56, %57 : vector<16x32xf32>
    %cst_28 = arith.constant 0.000000e+00 : f32
    %59 = vector.broadcast %cst_28 : f32 to vector<16x32xf32>
    %60 = arith.maximumf %58, %59 : vector<16x32xf32>
    %c0_29 = arith.constant 0 : index
    %c0_30 = arith.constant 0 : index
    %61 = vector.load %arg6[%c0_29, %c0_30] : memref<16x32xf32, #tpu.memory_space<vmem>>, vector<16x32xf32>
    tpu.vector_store %arg6[%c0_29, %c0_30], %60 {strides = array<i32>} : memref<16x32xf32, #tpu.memory_space<vmem>>, vector<16x32xf32>,
    return
  }
}

</mosaic_0001>

<bundles_post_ra>
// kernel: tpu_custom_call.1
= control target key start
LH: loop header
LB: loop body
LE: loop exit
PB: predicated region body
PF: predicated region fallthrough
CT: control target
= control target key end

     0   :  { %v619_v1 = vmov 0.0   ;;  %vm620_vm0 = vmmov 0   ;;  %vm40_vm1 = vcmask 130048   ;;  %s769_s0 = inlined_call_operand.vmem [shape: bf16[16,32], index: 0, kind: input, shape index: {}]   ;;  %s770_s1 = inlined_call_operand.vmem [shape: bf16[16,16], index: 1, kind: input, shape index: {}]   ;;  %s771_s2 = inlined_call_operand.vmem [shape: bf16[64,128], index: 2, kind: input, shape index: {}]   ;;  %s772_s3 = inlined_call_operand.vmem [shape: f32[2,128], index: 3, kind: input, shape index: {}]   ;;  %s773_s4 = inlined_call_operand.vmem [shape: bf16[256,32], index: 4, kind: input, shape index: {}]   ;;  %s774_s5 = inlined_call_operand.vmem [shape: f32[2,32], index: 5, kind: input, shape index: {}]   ;;  %s775_s6 = inlined_call_operand.hbm [shape: f32[16,32], index: 6, kind: output, shape index: {}]  }
   0x1   :  { %v569_v0 = vld [vmem:[%s769_s0] sm:$0xff]   ;;  %539 = vmatprep.subr.bf16.mxu1 %v619_v1  ;;  %541 = vmatprep.mubr.msk.bf16.mxu1 %vm620_vm0, %v619_v1 }
   0x2   :  { %v666_v2 = vld [vmem:[%s770_s1] sm:$0xff]   ;;  %540 = vmatpush3.bf16.msra.mxu1 %v569_v0 }
   0x3   :  { %545 = vmatprep.subr.bf16.mxu1 %v619_v1 }
   0x5   :  { %542 = vmatmul.mubr.msk.bf16.vlgmr.msra.gmra.mrb[0].mxu1 %vm40_vm1, %v666_v2 }
   0x6   :  { %553 = vmatprep.mubr.msk.bf16.mxu1 %vm620_vm0, %v619_v1 }
   0x7   :  { %11 = vsyncpa [#allocation3], 0  ;;  %v571_v3 = vld [vmem:[%s771_s2] sm:$0xff]   ;;  %v572_v4 = vld [vmem:[%s771_s2 + $0x8] sm:$0xff]   ;;  %s621_s7 = smov 32   ;;  %vm89_vm2 = vcmask 261120   ;;  %v194_v53 = vlaneseq }
   0x8   :  { %546 = vmatpush3.bf16.msra.mxu1 %v571_v3  ;;  %v573_v5 = vld [vmem:[%s771_s2 + $0x10] sm:$0xff]   ;;  %v574_v6 = vld [vmem:[%s771_s2 + $0x18] sm:$0xff]   ;;  %vm125_vm3 = vcmask 523264   ;;  %v575_v14 = vld [vmem:[%s773_s4 + $0x40] sm:$0xff]   ;;  %s622_s18 = smov [#allocation2]  }
   0x9   :  { %547 = vmatprep.subr.bf16.mxu1 %v619_v1  ;;  %v576_v15 = vld [vmem:[%s773_s4] sm:$0xff]   ;;  %v577_v16 = vld [vmem:[%s773_s4 + $0x48] sm:$0xff]   ;;  %517 = vmatprep.subr.bf16.mxu0 %v575_v14  ;;  %v579_v18 = vld [vmem:[%s773_s4 + $0x50] sm:$0xff]   ;;  %v728_v54 = vshrl.u32 %v194_v53, 7  ;;  %s470_s19 = sshll.u32 %s622_s18, 4  ;;  %s471_s19 = int_to_ptr.vmem [resolvable:$true] %s470_s19 }
   0xa   :  { %518 = vmatpush3.bf16.msra.mxu0 %v576_v15  ;;  %v578_v17 = vld [vmem:[%s773_s4 + $0x8] sm:$0xff]   ;;  %v580_v19 = vld [vmem:[%s773_s4 + $0x10] sm:$0xff]   ;;  %v581_v20 = vld [vmem:[%s773_s4 + $0x58] sm:$0xff]   ;;  %s595_s20 = scalar_lea.vmem %s471_s19, 256  ;;  %p600_p1 = scmp.lt.s32.totalorder %s471_s19, %s471_s19 }
   0xb   :  { %519 = vmatprep.subr.bf16.mxu0 %v577_v16  ;;  %v582_v21 = vld [vmem:[%s773_s4 + $0x18] sm:$0xff]   ;;  %v583_v22 = vld [vmem:[%s773_s4 + $0x60] sm:$0xff]   ;;  %v585_v24 = vld [vmem:[%s773_s4 + $0x68] sm:$0xff]   ;;  %v196_v56 = vsub.s32 0, %v728_v54  ;;  %p596_p0 = scmp.ne.s32.totalorder %s471_s19, %s595_s20  ;;  %p601_p2 = scmp.lt.s32.totalorder %s595_s20, %s595_s20 }
   0xc   :  { %548 = vmatpush3.bf16.msra.mxu1 %v572_v4  ;;  %v584_v23 = vld [vmem:[%s773_s4 + $0x20] sm:$0xff]   ;;  %v586_v25 = vld [vmem:[%s773_s4 + $0x28] sm:$0xff]   ;;  %v587_v26 = vld [vmem:[%s773_s4 + $0x70] sm:$0xff]  }
   0xd   :  { %549 = vmatprep.subr.bf16.mxu1 %v619_v1  ;;  %v588_v27 = vld [vmem:[%s773_s4 + $0x30] sm:$0xff]   ;;  %v191_v55 = vld [vmem:[%s772_s3] sm:$0x1]  ;;  %v489_v60 = vld [vmem:[%s772_s3 + $0x1] ss:$0 sm:$0xff]  ;;  %p602_p3 = por %p601_p2, %p600_p1 }
   0xe   :  { %520 = vmatpush3.bf16.msra.mxu0 %v578_v17 }
   0xf   :  { %521 = vmatprep.subr.bf16.mxu0 %v579_v18  ;;  %p603_p4 = pnand %p602_p3, %p596_p0 }
  0x10   :  { %550 = vmatpush3.bf16.msra.mxu1 %v573_v5  ;;  %v589_v5 = vld [vmem:[%s773_s4 + $0x78] sm:$0xff]  }
  0x11   :  { %551 = vmatprep.subr.bf16.mxu1 %v619_v1 }
  0x12   :  { %522 = vmatpush3.bf16.msra.mxu0 %v580_v19 }
  0x13   :  { %523 = vmatprep.subr.bf16.mxu0 %v581_v20 }
  0x14   :  { %552 = vmatpush3.bf16.msra.mxu1 %v574_v6  ;;  %v590_v6 = vld [vmem:[%s773_s4 + $0x38] sm:$0xff]  }
  0x15   :  { %557 = vmatprep.subr.bf16.mxu1 %v619_v1 }
  0x16   :  { %524 = vmatpush3.bf16.msra.mxu0 %v582_v21 }
  0x17   :  { %525 = vmatprep.subr.bf16.mxu0 %v583_v22 }
  0x1a   :  { %526 = vmatpush3.bf16.msra.mxu0 %v584_v23 }
  0x1b   :  { %527 = vmatprep.subr.bf16.mxu0 %v585_v24 }
  0x1e   :  { %528 = vmatpush3.bf16.msra.mxu0 %v586_v25 }
  0x1f   :  { %529 = vmatprep.subr.bf16.mxu0 %v587_v26 }
  0x22   :  { %530 = vmatpush3.bf16.msra.mxu0 %v588_v27 }
  0x23   :  { %531 = vmatprep.subr.bf16.mxu0 %v589_v5 }
  0x26   :  { %532 = vmatpush3.bf16.msra.mxu0 %v590_v6 }
  0xd8   :  { %v78_v7 = vpop.f32.mrb[0].mxu1 }
  0xd9   :  { %v543_v8 = vpop.f32.mrb[1].mxu1 }
  0xda   :  { %v81_v9 = vpop.f32.mrb[2].mxu1 }
  0xdb   :  { %v85_v10 = vpack.c.bf16 %v81_v9, %v78_v7  ;;  %v544_v11 = vpop.f32.mrb[3].mxu1 }
  0xdd   :  { %87 = vrot.lane.b32.xlu0 %v85_v10, %s621_s7 }
 0x14f   :  { %v88_v12 = vpop.permute.xlu0 %87 }
 0x150   :  { %v92_v13 = vsel %vm89_vm2, %v569_v0, %v88_v12 }
 0x151   :  { %554 = vmatmul.mubr.msk.bf16.vlgmr.msra.gmra.mrb[4].mxu1 %vm125_vm3, %v92_v13 }
 0x152   :  { %559 = vmatprep.mubr.msk.bf16.mxu1 %vm620_vm0, %v619_v1 }
 0x224   :  { %v162_v28 = vpop.f32.mrb[4].mxu1 }
 0x225   :  { %v555_v29 = vpop.f32.mrb[5].mxu1 }
 0x226   :  { %v165_v30 = vpop.f32.mrb[6].mxu1 }
 0x227   :  { %v169_v31 = vadd.f32 %v165_v30, %v162_v28  ;;  %v556_v32 = vpop.f32.mrb[7].mxu1 }
 0x229   :  { %v170_v33 = vrot.slane %v169_v31, 4 }
 0x22b   :  { %v171_v34 = vadd.f32 %v170_v33, %v169_v31 }
 0x22d   :  { %v172_v35 = vrot.slane %v171_v34, 2 }
 0x22f   :  { %v173_v36 = vadd.f32 %v172_v35, %v171_v34 }
 0x231   :  { %v174_v37 = vrot.slane %v173_v36, 1 }
 0x233   :  { %v175_v38 = vadd.f32 %v174_v37, %v173_v36 }
 0x235   :  { %v176_v39 = vmul.f32 0.0625, %v175_v38 }
 0x237   :  { %v177_v40 = vsub.f32 %v162_v28, %v176_v39  ;;  %v178_v41 = vsub.f32 %v165_v30, %v176_v39 }
 0x239   :  { %v179_v42 = vmul.f32 %v177_v40, %v177_v40  ;;  %v180_v43 = vmul.f32 %v178_v41, %v178_v41 }
 0x23b   :  { %v181_v44 = vadd.f32 %v180_v43, %v179_v42  ;;  %v446_v42 = vld [vmem:[%s774_s5] sm:$0x1] }
 0x23d   :  { %v182_v45 = vrot.slane %v181_v44, 4 }
 0x23f   :  { %v183_v46 = vadd.f32 %v182_v45, %v181_v44 }
 0x241   :  { %v184_v47 = vrot.slane %v183_v46, 2 }
 0x243   :  { %v185_v48 = vadd.f32 %v184_v47, %v183_v46  ;;  %v507_v46 = vld [vmem:[%s774_s5 + $0x1] ss:$0 sm:$0xff] }
 0x245   :  { %v186_v49 = vrot.slane %v185_v48, 1 }
 0x247   :  { %v187_v50 = vadd.f32 %v186_v49, %v185_v48 }
 0x249   :  { %v188_v51 = vmul.f32 0.0625, %v187_v50 }
 0x24b   :  { %v189_v52 = vadd.f32 1e-05, %v188_v51 }
 0x24d   :  { %591 = vrsqrt.f32 %v189_v52 }
 0x257   :  { %v592_v57 = vpop.eup %591 }
 0x258   :  { %v193_v58 = vmul.f32 %v592_v57, %v191_v55 }
 0x25a   :  { %v197_v59 = vrot.slane %v193_v58, %v196_v56 }
 0x25c   :  { %v198_v61 = vmul.f32 %v197_v59, %v177_v40  ;;  %v199_v62 = vmul.f32 %v197_v59, %v178_v41 }
 0x25e   :  { %v204_v63 = vadd.f32 %v489_v60, %v198_v61  ;;  %v205_v0 = vadd.f32 %v489_v60, %v199_v62 }
 0x260   :  { %v206_v1 = vmax.f32 %v204_v63, 0.0  ;;  %v207_v3 = vmax.f32 %v205_v0, 0.0 }
 0x262   :  { %v208_v4 = vpack.c.bf16 %v207_v3, %v206_v1 }
 0x264   :  { %558 = vmatpush3.bf16.msra.mxu1 %v208_v4 }
 0x267   :  { %560 = vmatmul.mubr.msk.bf16.vlgmr.msra.gmra.mrb[8].mxu1 %vm40_vm1, %v666_v2 }
 0x33a   :  { %v243_v7 = vpop.f32.mrb[8].mxu1 }
 0x33b   :  { %v561_v8 = vpop.f32.mrb[9].mxu1 }
 0x33c   :  { %v246_v9 = vpop.f32.mrb[10].mxu1 }
 0x33d   :  { %v562_v10 = vpop.f32.mrb[11].mxu1  ;;  %v250_v11 = vpack.c.bf16 %v246_v9, %v243_v7 }
 0x33f   :  { %411 = vmatprep.mubr.bf16.mxu0 %v250_v11 }
 0x340   :  { %412 = vmatmul.mubr.bf16.vlgmr.msra.gmra.mrb[0].mxu0 %v208_v4 }
 0x413   :  { %v533_v12 = vpop.f32.mrb[0].mxu0 }
 0x414   :  { %v534_v13 = vpop.f32.mrb[1].mxu0 }
 0x415   :  { %v535_v2 = vadd.f32 %v534_v13, %v533_v12  ;;  %v536_v14 = vpop.f32.mrb[2].mxu0 }
 0x416   :  { %v537_v15 = vpop.f32.mrb[3].mxu0 }
 0x417   :  { %v538_v16 = vadd.f32 %v537_v15, %v536_v14  ;;  %v420_v17 = vsel %vm89_vm2, %v535_v2, 0.0 }
 0x419   :  { %v421_v18 = vsel %vm89_vm2, %v538_v16, 0.0 }
 0x41a   :  { %v422_v19 = vadd.f32 %v421_v18, %v420_v17 }
 0x41c   :  { %v423_v20 = vrot.slane %v422_v19, 4 }
 0x41e   :  { %v424_v21 = vadd.f32 %v423_v20, %v422_v19 }
 0x420   :  { %v425_v22 = vrot.slane %v424_v21, 2 }
 0x422   :  { %v426_v23 = vadd.f32 %v425_v22, %v424_v21 }
 0x424   :  { %v427_v24 = vrot.slane %v426_v23, 1 }
 0x426   :  { %v428_v25 = vadd.f32 %v427_v24, %v426_v23 }
 0x428   :  { %v429_v26 = vmul.f32 0.0625, %v428_v25 }
 0x42a   :  { %v430_v27 = vsub.f32 %v535_v2, %v429_v26  ;;  %v431_v28 = vsub.f32 %v538_v16, %v429_v26 }
 0x42c   :  { %v432_v29 = vmul.f32 %v430_v27, %v430_v27  ;;  %v433_v30 = vmul.f32 %v431_v28, %v431_v28 }
 0x42e   :  { %v434_v31 = vsel %vm89_vm2, %v432_v29, 0.0  ;;  %v435_v32 = vsel %vm89_vm2, %v433_v30, 0.0 }
 0x42f   :  { %v436_v33 = vadd.f32 %v435_v32, %v434_v31 }
 0x431   :  { %v437_v34 = vrot.slane %v436_v33, 4 }
 0x433   :  { %v438_v35 = vadd.f32 %v437_v34, %v436_v33 }
 0x435   :  { %v439_v36 = vrot.slane %v438_v35, 2 }
 0x437   :  { %v440_v37 = vadd.f32 %v439_v36, %v438_v35 }
 0x439   :  { %v441_v38 = vrot.slane %v440_v37, 1 }
 0x43b   :  { %v442_v39 = vadd.f32 %v441_v38, %v440_v37 }
 0x43d   :  { %v443_v40 = vmul.f32 0.0625, %v442_v39 }
 0x43f   :  { %v444_v41 = vadd.f32 1e-05, %v443_v40 }
 0x441   :  { %593 = vrsqrt.f32 %v444_v41 }
 0x44b   :  { %v594_v43 = vpop.eup %593 }
 0x44c   :  { %v448_v44 = vmul.f32 %v594_v43, %v446_v42 }
 0x44e   :  { %v452_v45 = vrot.slane %v448_v44, %v196_v56 }
 0x450   :  { %v453_v47 = vmul.f32 %v452_v45, %v430_v27  ;;  %v454_v48 = vmul.f32 %v452_v45, %v431_v28 }
 0x452   :  { %v459_v49 = vadd.f32 %v507_v46, %v453_v47  ;;  %v460_v50 = vadd.f32 %v507_v46, %v454_v48 }
 0x454   :  { %v461_v51 = vmax.f32 %v459_v49, 0.0  ;;  %v462_v52 = vmax.f32 %v460_v50, 0.0 }
 0x456   :  { %463 = vst.msk [vmem:[#allocation2] sm:$0xff] %vm89_vm2, %v461_v51  ;;  %464 = vst.msk [vmem:[#allocation2 + $0x8] sm:$0xff] %vm89_vm2, %v462_v52 }
 0x457   :  { %606 = shalt.err (!%p603_p4)
}
 0x458   :  { %s607_s22 = scalar_lea.hbm %s775_s6, 256 }
 0x459   :  { %p608_p5 = scmp.ne.s32.totalorder %s775_s6, %s607_s22  ;;  %p611_p6 = scmp.lt.u32.totalorder %s607_s22, %s775_s6 }
 0x45b   :  { %p613_p7 = pnand %p611_p6, %p608_p5 }
 0x45d   :  { %616 = shalt.err (!%p613_p7)
}
 0x45e   :  { %s623_s26 = smov 128   ;;  %s624_s1 = smov 8  }
 0x45f   :  { %476 = dma.vmem_to_hbm [thread:$0]  %s471_s19, 256, %s775_s6, [#allocation3], %s623_s26, %s623_s26, %s624_s1  }
 0x460   :  { %617 = dma.done.wait [#allocation3], 256  }
 0x461   :  { %618 = vsyncadd [#allocation3], 4294967040 }
 0x462   :  { %480 = vsyncpa [#allocation3], 1 }

</bundles_post_ra>
